<compile_context>
chip_gen: v7x
topology: tpu7x:2x2x1
jax: 0.10.0
libtpu: 0.0.40
codegen_flags: <defaults>
</compile_context>

<pallas_src>
from functools import partial

import numpy as np
import jax
import jax.numpy as jnp
from jax.experimental import pallas as pl
from jax.experimental.pallas import tpu as pltpu


def place_actor_kernel(feat_ref, w_embT_ref, b_embT_ref, wqkT_ref,
                       bqT_ref, bkT_ref, out_ref, *, H, inv_sqrt_dk):
    bt = feat_ref.shape[1]                         # static batch-tile (lanes)

    feat = feat_ref[...].astype(jnp.float32)       # (4, bt)
    place0 = feat[0:1, :]                          # (1, bt)  sublane-broadcast
    place1 = feat[1:2, :]
    proc0 = feat[2:3, :]
    proc1 = feat[3:4, :]

    w_embT = w_embT_ref[...]                       # (H, 2)
    w_p = w_embT[:, 0:1]                           # (H, 1)  lane-broadcast
    w_t = w_embT[:, 1:2]                           # (H, 1)
    b_e = b_embT_ref[...]                          # (H, 1)

    # ---- Encoder stand-in: K=2 embed on the VPU, tanh; batch on lanes -------
    n0 = jnp.tanh(w_p * place0 + w_t * proc0 + b_e)          # (H, bt)
    n1 = jnp.tanh(w_p * place1 + w_t * proc1 + b_e)          # (H, bt)

    # ---- single fused [wq|wk] matmul over both candidate nodes --------------
    # lane concat (bt is a multiple of 128 -> pure vreg placement)
    x = jnp.concatenate([n0, n1], axis=1)                    # (H, 2bt)
    fused = jnp.dot(wqkT_ref[...], x,
                    preferred_element_type=jnp.float32)      # (2H, 2bt)

    # query = wq(mean(n0,n1)) + bq, recovered by linearity
    query = 0.5 * (fused[:H, :bt] + fused[:H, bt:]) + bqT_ref[...]   # (H, bt)
    key0 = fused[H:, :bt] + bkT_ref[...]                             # (H, bt)
    key1 = fused[H:, bt:] + bkT_ref[...]                             # (H, bt)

    # ---- attention-style score: two short sublane reduces over H ------------
    s0 = jnp.sum(query * key0, axis=0, keepdims=True) * inv_sqrt_dk  # (1, bt)
    s1 = jnp.sum(query * key1, axis=0, keepdims=True) * inv_sqrt_dk
    t0 = jnp.tanh(s0) * 10.0                                         # C = 10
    t1 = jnp.tanh(s1) * 10.0

    # ---- 2-way softmax, symmetric logistic form (no cancellation) -----------
    p1 = 1.0 / (1.0 + jnp.exp(t0 - t1))
    p0 = 1.0 / (1.0 + jnp.exp(t1 - t0))

    # greedy action (argmax; first index wins on ties, like torch.argmax)
    take1 = p1 > p0
    chosen = jnp.where(take1, p1, p0)              # ppp[p_tag1 + action_index]
    act = take1.astype(jnp.float32)

    # ---- single fused lane-dense output write --------------------------------
    out_ref[...] = jnp.concatenate([p0, p1, chosen, act], axis=0)    # (4, bt)


def place_actor_forward(index, place_time, process_time,
                        place_action_probability, params,
                        *, hidden_dim, M, n_j, batch_tile=None):
    """index: scheduling step; place_time/process_time: (batch, 2).

    batch_tile: optional multiple of 128; use ~2 tiles on v7x for large
    batches, leave None (single grid step) on single-TensorCore v5e/v6e.
    """
    batch = place_time.shape[0]
    H = hidden_dim

    # ---- pack inputs once: rows [place0, place1, proc0, proc1] --------------
    feat = jnp.concatenate([place_time.T, process_time.T], axis=0)   # (4, batch)

    # lane-axis padding / tiling: everything is a multiple of 128 lanes
    if batch_tile is None:
        tile = ((batch + 127) // 128) * 128        # single grid step
    else:
        tile = max(128, ((batch_tile + 127) // 128) * 128)
    batch_p = ((batch + tile - 1) // tile) * tile
    if batch_p != batch:
        feat = jnp.pad(feat, ((0, 0), (0, batch_p - batch)))
    grid = (batch_p // tile,)

    # ---- weights: transpose once, fuse [wq|wk] -------------------------------
    w_embT = params["w_emb"].T                       # (H, 2)
    b_embT = params["b_emb"].T                       # (H, 1)
    wqkT = jnp.concatenate([params["wq"].T, params["wk"].T], axis=0)  # (2H, H)
    bqT = params["bq"].T                             # (H, 1)
    bkT = params["bk"].T                             # (H, 1)

    inv_sqrt_dk = 1.0 / float((hidden_dim / M) ** 0.5)

    const_spec = lambda shape: pl.BlockSpec(shape, lambda i: (0, 0))

    out = pl.pallas_call(
        partial(place_actor_kernel, H=H, inv_sqrt_dk=inv_sqrt_dk),
        out_shape=jax.ShapeDtypeStruct((4, batch_p), jnp.float32),
        grid_spec=pltpu.PrefetchScalarGridSpec(
            num_scalar_prefetch=0,
            grid=grid,
            in_specs=[
                pl.BlockSpec((4, tile), lambda i: (0, i)),   # packed features
                const_spec((H, 2)),                          # w_emb^T (resident)
                const_spec((H, 1)),                          # b_emb^T
                const_spec((2 * H, H)),                      # [wq^T ; wk^T]
                const_spec((H, 1)),                          # bq^T
                const_spec((H, 1)),                          # bk^T
            ],
            out_specs=pl.BlockSpec((4, tile), lambda i: (0, i)),
        ),
        compiler_params=pltpu.CompilerParams(
            dimension_semantics=("parallel",)),
    )(feat, w_embT, b_embT, wqkT, bqT, bkT)

    out = out[:, :batch]                             # drop lane padding
    p = out[:2].T[:, :, None]                        # (batch, 2, 1) like torch `p`
    chosen = out[2]
    action_index = out[3].astype(jnp.int32)

    # place_action_probability[p_tag + index] = ppp[p_tag1 + action_index]
    p_tag = n_j * jnp.arange(batch)
    new_pap = place_action_probability.at[p_tag + index].set(chosen)
    return action_index, p, new_pap


def reference_forward(index, place_time, process_time, pap, params,
                      *, hidden_dim, M, n_j):
    """Pure-JAX reference of the same forward (for correctness checking)."""
    hi = jax.lax.Precision.HIGHEST
    batch = place_time.shape[0]
    feas = jnp.stack([place_time, process_time], axis=2).astype(jnp.float32)
    nodes = jnp.tanh(jnp.einsum("bnf,fh->bnh", feas, params["w_emb"],
                                precision=hi) + params["b_emb"])
    grapha = jnp.mean(nodes, axis=1)
    query = jnp.einsum("bh,hk->bk", grapha, params["wq"],
                       precision=hi) + params["bq"]
    key = jnp.einsum("bnh,hk->bnk", nodes, params["wk"],
                     precision=hi) + params["bk"]
    temp = jnp.sum(query[:, None, :] * key, axis=2) / ((hidden_dim / M) ** 0.5)
    temp = jnp.tanh(temp) * 10.0
    p = jax.nn.softmax(temp, axis=1)
    action = jnp.argmax(p, axis=1)
    chosen = jnp.take_along_axis(p, action[:, None], axis=1)[:, 0]
    p_tag = n_j * jnp.arange(batch)
    new_pap = pap.at[p_tag + index].set(chosen)
    return action, p[:, :, None], new_pap


def init_params(key, hidden_dim):
    ks = jax.random.split(key, 12)
    s = 0.1
    params = {
        # encoder stand-in
        "w_emb": s * jax.random.normal(ks[0], (2, hidden_dim), jnp.float32),
        "b_emb": s * jax.random.normal(ks[1], (1, hidden_dim), jnp.float32),
        # wq / wk stored as (in, out), i.e. already transposed vs torch Linear.weight
        "wq": s * jax.random.normal(ks[2], (hidden_dim, hidden_dim), jnp.float32),
        "bq": s * jax.random.normal(ks[3], (1, hidden_dim), jnp.float32),
        "wk": s * jax.random.normal(ks[4], (hidden_dim, hidden_dim), jnp.float32),
        "bk": s * jax.random.normal(ks[5], (1, hidden_dim), jnp.float32),
        # defined in __init__ but unused by forward (kept for shape fidelity)
        "wv": s * jax.random.normal(ks[6], (hidden_dim, hidden_dim), jnp.float32),
        "w":  s * jax.random.normal(ks[7], (hidden_dim, hidden_dim), jnp.float32),
        "q":  s * jax.random.normal(ks[8], (hidden_dim, hidden_dim), jnp.float32),
        "k":  s * jax.random.normal(ks[9], (hidden_dim, hidden_dim), jnp.float32),
    }
    return params


if __name__ == "__main__":
    hidden_dim, M, n_j = 32, 4, 8
    index = 1  # scheduling step

    key = jax.random.PRNGKey(0)
    kp, k1, k2, k3, k4 = jax.random.split(key, 5)
    params = init_params(kp, hidden_dim)

    # ---- small case (batch=2, single grid step, lane-padded to 128) --------
    batch = 2
    place_time = jax.random.uniform(k1, (batch, 2), jnp.float32)
    process_time = jax.random.uniform(k2, (batch, 2), jnp.float32)
    pap = jnp.zeros((batch * n_j,), jnp.float32)

    action_index, p, new_pap = place_actor_forward(
        index, place_time, process_time, pap, params,
        hidden_dim=hidden_dim, M=M, n_j=n_j)
    jax.block_until_ready((action_index, p, new_pap))

    a_ref, p_ref, pap_ref = reference_forward(
        index, place_time, process_time, pap, params,
        hidden_dim=hidden_dim, M=M, n_j=n_j)
    np.testing.assert_allclose(np.asarray(p), np.asarray(p_ref),
                               rtol=1e-3, atol=1e-3)
    np.testing.assert_allclose(np.asarray(new_pap), np.asarray(pap_ref),
                               rtol=1e-3, atol=1e-3)
    np.testing.assert_array_equal(np.asarray(action_index), np.asarray(a_ref))

    # ---- larger batch exercising the 2-way parallel grid (v7x style) --------
    batch2 = 256
    place_time2 = jax.random.uniform(k3, (batch2, 2), jnp.float32)
    process_time2 = jax.random.uniform(k4, (batch2, 2), jnp.float32)
    pap2 = jnp.zeros((batch2 * n_j,), jnp.float32)

    a2, p2, new_pap2 = place_actor_forward(
        index, place_time2, process_time2, pap2, params,
        hidden_dim=hidden_dim, M=M, n_j=n_j, batch_tile=128)
    jax.block_until_ready((a2, p2, new_pap2))

    a2_ref, p2_ref, pap2_ref = reference_forward(
        index, place_time2, process_time2, pap2, params,
        hidden_dim=hidden_dim, M=M, n_j=n_j)
    np.testing.assert_allclose(np.asarray(p2), np.asarray(p2_ref),
                               rtol=1e-3, atol=1e-3)
    np.testing.assert_allclose(np.asarray(new_pap2), np.asarray(pap2_ref),
                               rtol=1e-3, atol=1e-3)
    np.testing.assert_array_equal(np.asarray(a2), np.asarray(a2_ref))

    print("KERNEL_OK")
</pallas_src>

<mosaic_0001>
module attributes {stable_mosaic.version = 11 : i64} {
  func.func @place_actor_kernel(%arg0: i32, %arg1: memref<4x128xf32, #tpu.memory_space<vmem>>, %arg2: memref<32x2xf32, #tpu.memory_space<vmem>>, %arg3: memref<32x1xf32, #tpu.memory_space<vmem>>, %arg4: memref<64x32xf32, #tpu.memory_space<vmem>>, %arg5: memref<32x1xf32, #tpu.memory_space<vmem>>, %arg6: memref<32x1xf32, #tpu.memory_space<vmem>>, %arg7: memref<4x128xf32, #tpu.memory_space<vmem>>) attributes {dimension_semantics = [#tpu.dimension_semantics<parallel>], iteration_bounds = array<i64: 1>, scalar_prefetch = 0 : i64, scratch_operands = 0 : i64, tpu.core_type = #tpu.core_type<tc>, window_params = [{transform_indices = @transform_0, window_bounds = array<i64: 4, 128>}, {pipeline_mode = #tpu.pipeline_mode<synchronous>, transform_indices = @transform_1, window_bounds = array<i64: 32, 2>}, {pipeline_mode = #tpu.pipeline_mode<synchronous>, transform_indices = @transform_2, window_bounds = array<i64: 32, 1>}, {pipeline_mode = #tpu.pipeline_mode<synchronous>, transform_indices = @transform_3, window_bounds = array<i64: 64, 32>}, {pipeline_mode = #tpu.pipeline_mode<synchronous>, transform_indices = @transform_4, window_bounds = array<i64: 32, 1>}, {pipeline_mode = #tpu.pipeline_mode<synchronous>, transform_indices = @transform_5, window_bounds = array<i64: 32, 1>}, {transform_indices = @transform_6, window_bounds = array<i64: 4, 128>}]} {
    %c0 = arith.constant 0 : index
    %c0_0 = arith.constant 0 : index
    %0 = vector.load %arg1[%c0, %c0_0] : memref<4x128xf32, #tpu.memory_space<vmem>>, vector<4x128xf32>
    %1 = vector.extract_strided_slice %0 {offsets = [0, 0], sizes = [1, 128], strides = [1, 1]} : vector<4x128xf32> to vector<1x128xf32>
    %2 = vector.extract_strided_slice %0 {offsets = [1, 0], sizes = [1, 128], strides = [1, 1]} : vector<4x128xf32> to vector<1x128xf32>
    %3 = vector.extract_strided_slice %0 {offsets = [2, 0], sizes = [1, 128], strides = [1, 1]} : vector<4x128xf32> to vector<1x128xf32>
    %4 = vector.extract_strided_slice %0 {offsets = [3, 0], sizes = [1, 128], strides = [1, 1]} : vector<4x128xf32> to vector<1x128xf32>
    %c0_1 = arith.constant 0 : index
    %c0_2 = arith.constant 0 : index
    %5 = vector.load %arg2[%c0_1, %c0_2] : memref<32x2xf32, #tpu.memory_space<vmem>>, vector<32x2xf32>
    %6 = vector.extract_strided_slice %5 {offsets = [0, 0], sizes = [32, 1], strides = [1, 1]} : vector<32x2xf32> to vector<32x1xf32>
    %7 = vector.extract_strided_slice %5 {offsets = [0, 1], sizes = [32, 1], strides = [1, 1]} : vector<32x2xf32> to vector<32x1xf32>
    %c0_3 = arith.constant 0 : index
    %c0_4 = arith.constant 0 : index
    %8 = vector.load %arg3[%c0_3, %c0_4] : memref<32x1xf32, #tpu.memory_space<vmem>>, vector<32x1xf32>
    %9 = vector.broadcast %6 : vector<32x1xf32> to vector<32x128xf32>
    %10 = vector.broadcast %1 : vector<1x128xf32> to vector<32x128xf32>
    %11 = arith.mulf %9, %10 : vector<32x128xf32>
    %12 = vector.broadcast %7 : vector<32x1xf32> to vector<32x128xf32>
    %13 = vector.broadcast %3 : vector<1x128xf32> to vector<32x128xf32>
    %14 = arith.mulf %12, %13 : vector<32x128xf32>
    %15 = arith.addf %11, %14 : vector<32x128xf32>
    %16 = vector.broadcast %8 : vector<32x1xf32> to vector<32x128xf32>
    %17 = arith.addf %15, %16 : vector<32x128xf32>
    %18 = math.tanh %17 : vector<32x128xf32>
    %19 = vector.broadcast %6 : vector<32x1xf32> to vector<32x128xf32>
    %20 = vector.broadcast %2 : vector<1x128xf32> to vector<32x128xf32>
    %21 = arith.mulf %19, %20 : vector<32x128xf32>
    %22 = vector.broadcast %7 : vector<32x1xf32> to vector<32x128xf32>
    %23 = vector.broadcast %4 : vector<1x128xf32> to vector<32x128xf32>
    %24 = arith.mulf %22, %23 : vector<32x128xf32>
    %25 = arith.addf %21, %24 : vector<32x128xf32>
    %26 = vector.broadcast %8 : vector<32x1xf32> to vector<32x128xf32>
    %27 = arith.addf %25, %26 : vector<32x128xf32>
    %28 = math.tanh %27 : vector<32x128xf32>
    %29 = tpu.concatenate %18, %28 in 1 : vector<32x128xf32>, vector<32x128xf32> -> vector<32x256xf32>
    %c0_5 = arith.constant 0 : index
    %c0_6 = arith.constant 0 : index
    %30 = vector.load %arg4[%c0_5, %c0_6] : memref<64x32xf32, #tpu.memory_space<vmem>>, vector<64x32xf32>
    %cst = arith.constant dense<0.000000e+00> : vector<64x256xf32>
    %31 = tpu.matmul %30, %29, %cst {dimension_numbers = #tpu.dot_dimension_numbers<[1], [0], [0], [1], [0, 0, 1, 1], [], []>} : vector<64x32xf32>, vector<32x256xf32>, vector<64x256xf32> -> vector<64x256xf32>
    %32 = vector.extract_strided_slice %31 {offsets = [0, 0], sizes = [32, 128], strides = [1, 1]} : vector<64x256xf32> to vector<32x128xf32>
    %33 = vector.extract_strided_slice %31 {offsets = [0, 128], sizes = [32, 128], strides = [1, 1]} : vector<64x256xf32> to vector<32x128xf32>
    %34 = arith.addf %32, %33 : vector<32x128xf32>
    %cst_7 = arith.constant 5.000000e-01 : f32
    %35 = vector.broadcast %cst_7 : f32 to vector<32x128xf32>
    %36 = arith.mulf %35, %34 : vector<32x128xf32>
    %c0_8 = arith.constant 0 : index
    %c0_9 = arith.constant 0 : index
    %37 = vector.load %arg5[%c0_8, %c0_9] : memref<32x1xf32, #tpu.memory_space<vmem>>, vector<32x1xf32>
    %38 = vector.broadcast %37 : vector<32x1xf32> to vector<32x128xf32>
    %39 = arith.addf %36, %38 : vector<32x128xf32>
    %40 = vector.extract_strided_slice %31 {offsets = [32, 0], sizes = [32, 128], strides = [1, 1]} : vector<64x256xf32> to vector<32x128xf32>
    %c0_10 = arith.constant 0 : index
    %c0_11 = arith.constant 0 : index
    %41 = vector.load %arg6[%c0_10, %c0_11] : memref<32x1xf32, #tpu.memory_space<vmem>>, vector<32x1xf32>
    %42 = vector.broadcast %41 : vector<32x1xf32> to vector<32x128xf32>
    %43 = arith.addf %40, %42 : vector<32x128xf32>
    %44 = vector.extract_strided_slice %31 {offsets = [32, 128], sizes = [32, 128], strides = [1, 1]} : vector<64x256xf32> to vector<32x128xf32>
    %c0_12 = arith.constant 0 : index
    %c0_13 = arith.constant 0 : index
    %45 = vector.load %arg6[%c0_12, %c0_13] : memref<32x1xf32, #tpu.memory_space<vmem>>, vector<32x1xf32>
    %46 = vector.broadcast %45 : vector<32x1xf32> to vector<32x128xf32>
    %47 = arith.addf %44, %46 : vector<32x128xf32>
    %48 = arith.mulf %39, %43 : vector<32x128xf32>
    %cst_14 = arith.constant dense<0.000000e+00> : vector<128xf32>
    %49 = vector.multi_reduction <add>, %48, %cst_14 [0] : vector<32x128xf32> to vector<128xf32>
    %50 = vector.shape_cast %49 : vector<128xf32> to vector<1x128xf32>
    %cst_15 = arith.constant 0.353553385 : f32
    %51 = vector.broadcast %cst_15 : f32 to vector<1x128xf32>
    %52 = arith.mulf %50, %51 : vector<1x128xf32>
    %53 = arith.mulf %39, %47 : vector<32x128xf32>
    %cst_16 = arith.constant dense<0.000000e+00> : vector<128xf32>
    %54 = vector.multi_reduction <add>, %53, %cst_16 [0] : vector<32x128xf32> to vector<128xf32>
    %55 = vector.shape_cast %54 : vector<128xf32> to vector<1x128xf32>
    %cst_17 = arith.constant 0.353553385 : f32
    %56 = vector.broadcast %cst_17 : f32 to vector<1x128xf32>
    %57 = arith.mulf %55, %56 : vector<1x128xf32>
    %58 = math.tanh %52 : vector<1x128xf32>
    %cst_18 = arith.constant 1.000000e+01 : f32
    %59 = vector.broadcast %cst_18 : f32 to vector<1x128xf32>
    %60 = arith.mulf %58, %59 : vector<1x128xf32>
    %61 = math.tanh %57 : vector<1x128xf32>
    %cst_19 = arith.constant 1.000000e+01 : f32
    %62 = vector.broadcast %cst_19 : f32 to vector<1x128xf32>
    %63 = arith.mulf %61, %62 : vector<1x128xf32>
    %64 = arith.subf %60, %63 : vector<1x128xf32>
    %65 = math.exp %64 : vector<1x128xf32>
    %cst_20 = arith.constant 1.000000e+00 : f32
    %66 = vector.broadcast %cst_20 : f32 to vector<1x128xf32>
    %67 = arith.addf %66, %65 : vector<1x128xf32>
    %cst_21 = arith.constant 1.000000e+00 : f32
    %68 = vector.broadcast %cst_21 : f32 to vector<1x128xf32>
    %69 = arith.divf %68, %67 : vector<1x128xf32>
    %70 = arith.subf %63, %60 : vector<1x128xf32>
    %71 = math.exp %70 : vector<1x128xf32>
    %cst_22 = arith.constant 1.000000e+00 : f32
    %72 = vector.broadcast %cst_22 : f32 to vector<1x128xf32>
    %73 = arith.addf %72, %71 : vector<1x128xf32>
    %cst_23 = arith.constant 1.000000e+00 : f32
    %74 = vector.broadcast %cst_23 : f32 to vector<1x128xf32>
    %75 = arith.divf %74, %73 : vector<1x128xf32>
    %76 = arith.cmpf ogt, %69, %75 : vector<1x128xf32>
    %77 = arith.select %76, %69, %75 : vector<1x128xi1>, vector<1x128xf32>
    %78 = arith.extui %76 : vector<1x128xi1> to vector<1x128xi32>
    %79 = arith.sitofp %78 : vector<1x128xi32> to vector<1x128xf32>
    %80 = tpu.concatenate %75, %69, %77, %79 in 0 : vector<1x128xf32>, vector<1x128xf32>, vector<1x128xf32>, vector<1x128xf32> -> vector<4x128xf32>
    %c0_24 = arith.constant 0 : index
    %c0_25 = arith.constant 0 : index
    %81 = vector.load %arg7[%c0_24, %c0_25] : memref<4x128xf32, #tpu.memory_space<vmem>>, vector<4x128xf32>
    tpu.vector_store %arg7[%c0_24, %c0_25], %80 {strides = array<i32>} : memref<4x128xf32, #tpu.memory_space<vmem>>, vector<4x128xf32>,
    return
  }
  func.func @transform_0(%arg0: i32) -> (i32, i32) {
    %c0_i32 = arith.constant 0 : i32
    %c0_i32_0 = arith.constant 0 : i32
    return %c0_i32, %arg0 : i32, i32
  }
  func.func @transform_1(%arg0: i32) -> (i32, i32) {
    %c0_i32 = arith.constant 0 : i32
    %c0_i32_0 = arith.constant 0 : i32
    %c0_i32_1 = arith.constant 0 : i32
    return %c0_i32, %c0_i32_0 : i32, i32
  }
  func.func @transform_2(%arg0: i32) -> (i32, i32) {
    %c0_i32 = arith.constant 0 : i32
    %c0_i32_0 = arith.constant 0 : i32
    %c0_i32_1 = arith.constant 0 : i32
    return %c0_i32, %c0_i32_0 : i32, i32
  }
  func.func @transform_3(%arg0: i32) -> (i32, i32) {
    %c0_i32 = arith.constant 0 : i32
    %c0_i32_0 = arith.constant 0 : i32
    %c0_i32_1 = arith.constant 0 : i32
    return %c0_i32, %c0_i32_0 : i32, i32
  }
  func.func @transform_4(%arg0: i32) -> (i32, i32) {
    %c0_i32 = arith.constant 0 : i32
    %c0_i32_0 = arith.constant 0 : i32
    %c0_i32_1 = arith.constant 0 : i32
    return %c0_i32, %c0_i32_0 : i32, i32
  }
  func.func @transform_5(%arg0: i32) -> (i32, i32) {
    %c0_i32 = arith.constant 0 : i32
    %c0_i32_0 = arith.constant 0 : i32
    %c0_i32_1 = arith.constant 0 : i32
    return %c0_i32, %c0_i32_0 : i32, i32
  }
  func.func @transform_6(%arg0: i32) -> (i32, i32) {
    %c0_i32 = arith.constant 0 : i32
    %c0_i32_0 = arith.constant 0 : i32
    return %c0_i32, %arg0 : i32, i32
  }
}

</mosaic_0001>

<bundles_post_ra>
// kernel: tpu_custom_call.1
= control target key start
LH: loop header
LB: loop body
LE: loop exit
PB: predicated region body
PF: predicated region fallthrough
CT: control target
= control target key end

     0   :  { %v511_v2 = vmov 1   ;;  %s654_s0 = inlined_call_operand.vmem [shape: f32[4,128], index: 0, kind: input, shape index: {}]   ;;  %s655_s1 = inlined_call_operand.vmem [shape: f32[32,2], index: 1, kind: input, shape index: {}]   ;;  %s656_s2 = inlined_call_operand.vmem [shape: f32[32,1], index: 2, kind: input, shape index: {}]   ;;  %s657_s3 = inlined_call_operand.vmem [shape: f32[64,32], index: 3, kind: input, shape index: {}]   ;;  %s658_s4 = inlined_call_operand.vmem [shape: f32[32,1], index: 4, kind: input, shape index: {}]   ;;  %s659_s5 = inlined_call_operand.vmem [shape: f32[32,1], index: 5, kind: input, shape index: {}]   ;;  %s660_s6 = inlined_call_operand.hbm [shape: f32[4,128], index: 6, kind: output, shape index: {}]  }
   0x1   :  { %v27_v0 = vld [vmem:[%s655_s1 + $0x10] sm:$0xff]  ;;  %v25_v1 = vld [vmem:[%s655_s1] sm:$0xff]  ;;  %455 = vset.pattern.permute.xlu0 %v511_v2  ;;  %453 = vset.pattern.permute.xlu1 %v511_v2  ;;  %v26_v3 = vld [vmem:[%s655_s1 + $0x8] sm:$0xff] }
   0x2   :  { %70 = vperm.xlu0 %455, %v27_v0   ;;  %62 = vperm.xlu1 %453, %v25_v1  }
   0x3   :  { %11 = vsyncpa [#allocation3], 0  ;;  %v512_v4 = vmov 0   ;;  %v28_v5 = vld [vmem:[%s655_s1 + $0x18] sm:$0xff]  ;;  %v30_v6 = vld [vmem:[%s656_s2 + $0x8] sm:$0xff]  ;;  %v513_v18 = vmov 0.0   ;;  %v53_v19 = vlaneseq }
   0x4   :  { %v29_v7 = vld [vmem:[%s656_s2] sm:$0xff]  ;;  %v31_v9 = vld [vmem:[%s656_s2 + $0x10] sm:$0xff]  ;;  %v32_v11 = vld [vmem:[%s656_s2 + $0x18] sm:$0xff]  ;;  %242 = vmatprep.mubr.f32.mxu0 %v513_v18  ;;  %266 = vmatprep.mubr.f32.mxu1 %v513_v18  ;;  %vm153_vm0 = vcmask 261120   ;;  %vm407_vm1 = vcmask 1040384   ;;  %vm409_vm2 = vcmask 1041408  }
   0x5   :  { %v299_v8 = vld [vmem:[%s658_s4] sm:$0xff]  ;;  %v301_v12 = vld [vmem:[%s658_s4 + $0x10] sm:$0xff]  ;;  %v300_v13 = vld [vmem:[%s658_s4 + $0x8] sm:$0xff]  ;;  %v54_v22 = vshrl.u32 %v53_v19, 7  ;;  %vm411_vm4 = vcmask 1042432  }
   0x6   :  { %456 = vset.pattern.permute.xlu0 %v512_v4  ;;  %66 = vperm.xlu1 %453, %v26_v3   ;;  %v327_v10 = vld [vmem:[%s659_s5] sm:$0xff]  ;;  %v302_v14 = vld [vmem:[%s658_s4 + $0x18] sm:$0xff]  ;;  %v328_v15 = vld [vmem:[%s659_s5 + $0x8] sm:$0xff] }
   0x7   :  { %35 = vperm.xlu0 %456, %v25_v1   ;;  %v329_v16 = vld [vmem:[%s659_s5 + $0x10] sm:$0xff]  ;;  %v330_v17 = vld [vmem:[%s659_s5 + $0x18] sm:$0xff]  ;;  %v55_v24 = vsub.s32 0, %v54_v22  ;;  %v119_v26 = vsub.s32 1, %v54_v22  ;;  %v79_v27 = vsub.s32 2, %v54_v22  ;;  %v127_v28 = vsub.s32 3, %v54_v22 }
   0x8   :  { %v24_v29 = vld [vmem:[%s654_s0] sm:$0xf] }
   0x9   :  { %v56_v30 = vrot.slane %v24_v29, %v55_v24  ;;  %v120_v33 = vrot.slane %v24_v29, %v119_v26  ;;  %v80_v34 = vrot.slane %v24_v29, %v79_v27  ;;  %v128_v35 = vrot.slane %v24_v29, %v127_v28  ;;  %v149_v24 = vld [vmem:[%s657_s3 + $0x20] sm:$0xff]  ;;  %v150_v26 = vld [vmem:[%s657_s3 + $0x28] sm:$0xff]  ;;  %v147_v27 = vld [vmem:[%s657_s3 + $0x10] sm:$0xff] }
   0xa   :  { %454 = vset.pattern.permute.xlu1 %v512_v4  ;;  %v151_v28 = vld [vmem:[%s657_s3 + $0x30] sm:$0xff]  ;;  %v148_v29 = vld [vmem:[%s657_s3 + $0x18] sm:$0xff] }
   0xb   :  { %40 = vperm.xlu0 %456, %v26_v3   ;;  %50 = vperm.xlu1 %454, %v28_v5  }
   0xf   :  { %45 = vperm.xlu0 %456, %v27_v0   ;;  %457 = vset.pattern.permute.xlu1 %v511_v2 }
  0x10   :  { %74 = vperm.xlu1 %457, %v28_v5  }
  0x13   :  { %96 = vperm.xlu0 %456, %v30_v6  }
  0x14   :  { %458 = vset.pattern.permute.xlu1 %v512_v4 }
  0x15   :  { %91 = vperm.xlu1 %458, %v29_v7  }
  0x17   :  { %305 = vperm.xlu0 %456, %v299_v8  }
  0x19   :  { %101 = vperm.xlu1 %458, %v31_v9  }
  0x1b   :  { %333 = vperm.xlu0 %456, %v327_v10  }
  0x1d   :  { %106 = vperm.xlu1 %458, %v32_v11  }
  0x1f   :  { %315 = vperm.xlu0 %456, %v301_v12  }
  0x21   :  { %310 = vperm.xlu1 %458, %v300_v13  }
  0x23   :  { %320 = vperm.xlu0 %456, %v302_v14  }
  0x25   :  { %338 = vperm.xlu1 %458, %v328_v15  }
  0x29   :  { %343 = vperm.xlu1 %458, %v329_v16  }
  0x2d   :  { %348 = vperm.xlu1 %458, %v330_v17  }
  0x81   :  { %v63_v20 = vpop.permute.xlu1 %62  ;;  %v71_v21 = vpop.permute.xlu0 %70 }
  0x82   :  { %v81_v44 = vmul.f32 %v80_v34, %v63_v20  ;;  %v129_v45 = vmul.f32 %v128_v35, %v63_v20  ;;  %v83_v56 = vmul.f32 %v80_v34, %v71_v21  ;;  %v131_v59 = vmul.f32 %v128_v35, %v71_v21 }
  0x85   :  { %v67_v23 = vpop.permute.xlu1 %66 }
  0x86   :  { %v36_v25 = vpop.permute.xlu0 %35  ;;  %v82_v40 = vmul.f32 %v80_v34, %v67_v23  ;;  %v130_v41 = vmul.f32 %v128_v35, %v67_v23  ;;  %v145_v23 = vld [vmem:[%s657_s3] sm:$0xff] }
  0x87   :  { %v57_v38 = vmul.f32 %v56_v30, %v36_v25  ;;  %v121_v42 = vmul.f32 %v120_v33, %v36_v25  ;;  %v146_v25 = vld [vmem:[%s657_s3 + $0x8] sm:$0xff] }
  0x89   :  { %v85_v49 = vadd.f32 %v81_v44, %v57_v38  ;;  %v133_v53 = vadd.f32 %v129_v45, %v121_v42 }
  0x8a   :  { %v41_v31 = vpop.permute.xlu0 %40  ;;  %v51_v32 = vpop.permute.xlu1 %50 }
  0x8b   :  { %v58_v36 = vmul.f32 %v56_v30, %v41_v31  ;;  %v122_v37 = vmul.f32 %v120_v33, %v41_v31  ;;  %v60_v1 = vmul.f32 %v56_v30, %v51_v32  ;;  %v124_v2 = vmul.f32 %v120_v33, %v51_v32 }
  0x8d   :  { %v86_v46 = vadd.f32 %v82_v40, %v58_v36  ;;  %v134_v47 = vadd.f32 %v130_v41, %v122_v37 }
  0x8e   :  { %v46_v39 = vpop.permute.xlu0 %45 }
  0x8f   :  { %v75_v43 = vpop.permute.xlu1 %74  ;;  %v59_v50 = vmul.f32 %v56_v30, %v46_v39  ;;  %v123_v54 = vmul.f32 %v120_v33, %v46_v39  ;;  %v152_v30 = vld [vmem:[%s657_s3 + $0x38] sm:$0xff]  ;;  %s514_s3 = smov [#allocation2]  }
  0x90   :  { %v84_v60 = vmul.f32 %v80_v34, %v75_v43  ;;  %v132_v61 = vmul.f32 %v128_v35, %v75_v43  ;;  %s420_s17 = sshll.u32 %s514_s3, 4  ;;  %s421_s17 = int_to_ptr.vmem [resolvable:$true] %s420_s17 }
  0x91   :  { %v87_v62 = vadd.f32 %v83_v56, %v59_v50  ;;  %v135_v0 = vadd.f32 %v131_v59, %v123_v54  ;;  %s487_s18 = scalar_lea.vmem %s421_s17, 64  ;;  %p492_p1 = scmp.lt.s32.totalorder %s421_s17, %s421_s17 }
  0x92   :  { %v97_v48 = vpop.permute.xlu0 %96  ;;  %v88_v5 = vadd.f32 %v84_v60, %v60_v1  ;;  %v136_v6 = vadd.f32 %v132_v61, %v124_v2  ;;  %p488_p0 = scmp.ne.s32.totalorder %s421_s17, %s487_s18  ;;  %p493_p2 = scmp.lt.s32.totalorder %s487_s18, %s487_s18 }
  0x93   :  { %v110_v51 = vadd.f32 %v97_v48, %v86_v46  ;;  %v138_v52 = vadd.f32 %v134_v47, %v97_v48 }
  0x94   :  { %v92_v55 = vpop.permute.xlu1 %91  ;;  %p494_p3 = por %p493_p2, %p492_p1 }
  0x95   :  { %459 = vtanh.f32 %v110_v51  ;;  %v109_v57 = vadd.f32 %v92_v55, %v85_v49  ;;  %v137_v58 = vadd.f32 %v133_v53, %v92_v55 }
  0x96   :  { %461 = vtanh.f32 %v138_v52  ;;  %v306_v31 = vpop.permute.xlu0 %305  ;;  %p495_p4 = pnand %p494_p3, %p488_p0 }
  0x97   :  { %463 = vtanh.f32 %v109_v57 }
  0x98   :  { %465 = vtanh.f32 %v137_v58  ;;  %v102_v63 = vpop.permute.xlu1 %101 }
  0x99   :  { %v111_v3 = vadd.f32 %v102_v63, %v87_v62  ;;  %v139_v4 = vadd.f32 %v135_v0, %v102_v63 }
  0x9a   :  { %v334_v38 = vpop.permute.xlu0 %333 }
  0x9b   :  { %467 = vtanh.f32 %v111_v3 }
  0x9c   :  { %v107_v7 = vpop.permute.xlu1 %106  ;;  %469 = vtanh.f32 %v139_v4 }
  0x9d   :  { %v112_v8 = vadd.f32 %v107_v7, %v88_v5  ;;  %v140_v9 = vadd.f32 %v136_v6, %v107_v7 }
  0x9e   :  { %v316_v61 = vpop.permute.xlu0 %315 }
  0x9f   :  { %v460_v10 = vpop.eup %459  ;;  %471 = vtanh.f32 %v112_v8 }
  0xa0   :  { %v462_v11 = vpop.eup %461  ;;  %473 = vtanh.f32 %v140_v9  ;;  %v311_v32 = vpop.permute.xlu1 %310 }
  0xa1   :  { %v464_v12 = vpop.eup %463 }
  0xa2   :  { %v466_v13 = vpop.eup %465  ;;  %v439_v14 = vpack.c.bf16 %v460_v10, %v464_v12 }
  0xa3   :  { %v437_v15 = vpack.c.bf16 %v462_v11, %v466_v13 }
  0xa4   :  { %v339_v39 = vpop.permute.xlu1 %338 }
  0xa5   :  { %438 = vmatprep.subr.bf16.mxu0 %v437_v15  ;;  %445 = vmatprep.subr.bf16.mxu1 %v437_v15  ;;  %v468_v16 = vpop.eup %467  ;;  %v321_v15 = vpop.permute.xlu0 %320 }
  0xa6   :  { %440 = vmatpush1.bf16.msra.mxu0 %v439_v14  ;;  %447 = vmatpush1.bf16.msra.mxu1 %v439_v14  ;;  %v470_v17 = vpop.eup %469 }
  0xa8   :  { %v344_v56 = vpop.permute.xlu1 %343 }
  0xa9   :  { %v472_v19 = vpop.eup %471 }
  0xaa   :  { %v474_v20 = vpop.eup %473  ;;  %v443_v21 = vpack.c.bf16 %v472_v19, %v468_v16 }
  0xab   :  { %v441_v22 = vpack.c.bf16 %v474_v20, %v470_v17 }
  0xac   :  { %v349_v11 = vpop.permute.xlu1 %348 }
  0xad   :  { %442 = vmatprep.subr.bf16.mxu0 %v441_v22  ;;  %446 = vmatprep.subr.bf16.mxu1 %v441_v22 }
  0xae   :  { %444 = vmatpush1.bf16.msra.mxu0 %v443_v21  ;;  %448 = vmatpush1.bf16.msra.mxu1 %v443_v21 }
  0xb1   :  { %428 = vmatmul.mubr.msk.f32.vlgmr.msra.gmra.mrb[0].mxu0 %vm153_vm0, %v145_v23  ;;  %432 = vmatmul.mubr.msk.f32.vlgmr.msra.gmra.mrb[0].mxu1 %vm153_vm0, %v149_v24 }
  0xb2   :  { %248 = vmatprep.mubr.f32.mxu0 %v513_v18  ;;  %272 = vmatprep.mubr.f32.mxu1 %v513_v18 }
  0xb5   :  { %429 = vmatmul.mubr.msk.f32.gmra.mrb[2].mxu0 %vm153_vm0, %v146_v25  ;;  %433 = vmatmul.mubr.msk.f32.gmra.mrb[2].mxu1 %vm153_vm0, %v150_v26 }
  0xb6   :  { %254 = vmatprep.mubr.f32.mxu0 %v513_v18  ;;  %278 = vmatprep.mubr.f32.mxu1 %v513_v18 }
  0xb9   :  { %430 = vmatmul.mubr.msk.f32.gmra.mrb[4].mxu0 %vm153_vm0, %v147_v27  ;;  %434 = vmatmul.mubr.msk.f32.gmra.mrb[4].mxu1 %vm153_vm0, %v151_v28 }
  0xba   :  { %260 = vmatprep.mubr.f32.mxu0 %v513_v18  ;;  %284 = vmatprep.mubr.f32.mxu1 %v513_v18 }
  0xbd   :  { %431 = vmatmul.mubr.msk.f32.gmra.mrb[6].mxu0 %vm153_vm0, %v148_v29  ;;  %435 = vmatmul.mubr.msk.f32.gmra.mrb[6].mxu1 %vm153_vm0, %v152_v30 }
 0x184   :  { %v244_v33 = vpop.f32.mrb[0].mxu0  ;;  %v268_v34 = vpop.f32.mrb[0].mxu1 }
 0x185   :  { %v246_v35 = vpop.f32.mrb[1].mxu0  ;;  %v270_v36 = vpop.f32.mrb[1].mxu1  ;;  %v351_v45 = vadd.f32 %v334_v38, %v268_v34 }
 0x186   :  { %v291_v37 = vadd.f32 %v246_v35, %v244_v33  ;;  %v355_v47 = vadd.f32 %v334_v38, %v270_v36 }
 0x188   :  { %v295_v40 = vmul.f32 0.5, %v291_v37  ;;  %v250_v41 = vpop.f32.mrb[2].mxu0  ;;  %v274_v42 = vpop.f32.mrb[2].mxu1 }
 0x189   :  { %v252_v43 = vpop.f32.mrb[3].mxu0  ;;  %v276_v44 = vpop.f32.mrb[3].mxu1  ;;  %v352_v57 = vadd.f32 %v339_v39, %v274_v42 }
 0x18a   :  { %v323_v46 = vadd.f32 %v306_v31, %v295_v40  ;;  %v292_v48 = vadd.f32 %v252_v43, %v250_v41  ;;  %v356_v59 = vadd.f32 %v339_v39, %v276_v44 }
 0x18c   :  { %v359_v49 = vmul.f32 %v351_v45, %v323_v46  ;;  %v373_v50 = vmul.f32 %v355_v47, %v323_v46  ;;  %v296_v51 = vmul.f32 0.5, %v292_v48  ;;  %v256_v52 = vpop.f32.mrb[4].mxu0  ;;  %v280_v53 = vpop.f32.mrb[4].mxu1 }
 0x18d   :  { %v258_v54 = vpop.f32.mrb[5].mxu0  ;;  %v282_v55 = vpop.f32.mrb[5].mxu1  ;;  %v353_v3 = vadd.f32 %v344_v56, %v280_v53 }
 0x18e   :  { %v324_v58 = vadd.f32 %v311_v32, %v296_v51  ;;  %v293_v60 = vadd.f32 %v258_v54, %v256_v52  ;;  %v357_v4 = vadd.f32 %v344_v56, %v282_v55 }
 0x190   :  { %v360_v62 = vmul.f32 %v352_v57, %v324_v58  ;;  %v374_v63 = vmul.f32 %v356_v59, %v324_v58  ;;  %v297_v0 = vmul.f32 0.5, %v293_v60  ;;  %v262_v1 = vpop.f32.mrb[6].mxu0  ;;  %v286_v2 = vpop.f32.mrb[6].mxu1 }
 0x191   :  { %v264_v5 = vpop.f32.mrb[7].mxu0  ;;  %v288_v6 = vpop.f32.mrb[7].mxu1  ;;  %v354_v16 = vadd.f32 %v349_v11, %v286_v2 }
 0x192   :  { %v363_v7 = vadd.f32 %v360_v62, %v359_v49  ;;  %v377_v8 = vadd.f32 %v374_v63, %v373_v50  ;;  %v325_v9 = vadd.f32 %v316_v61, %v297_v0  ;;  %v294_v10 = vadd.f32 %v264_v5, %v262_v1 }
 0x193   :  { %v358_v21 = vadd.f32 %v349_v11, %v288_v6 }
 0x194   :  { %v361_v12 = vmul.f32 %v353_v3, %v325_v9  ;;  %v375_v13 = vmul.f32 %v357_v4, %v325_v9  ;;  %v298_v14 = vmul.f32 0.5, %v294_v10 }
 0x196   :  { %v364_v17 = vadd.f32 %v363_v7, %v361_v12  ;;  %v378_v19 = vadd.f32 %v377_v8, %v375_v13  ;;  %v326_v20 = vadd.f32 %v321_v15, %v298_v14 }
 0x198   :  { %v362_v22 = vmul.f32 %v354_v16, %v326_v20  ;;  %v376_v23 = vmul.f32 %v358_v21, %v326_v20 }
 0x19a   :  { %v365_v24 = vadd.f32 %v364_v17, %v362_v22  ;;  %v379_v25 = vadd.f32 %v378_v19, %v376_v23 }
 0x19c   :  { %v366_v26 = vrot.slane %v365_v24, 4  ;;  %v380_v27 = vrot.slane %v379_v25, 4 }
 0x19e   :  { %v367_v28 = vadd.f32 %v366_v26, %v365_v24  ;;  %v381_v29 = vadd.f32 %v380_v27, %v379_v25 }
 0x1a0   :  { %v368_v30 = vrot.slane %v367_v28, 2  ;;  %v382_v31 = vrot.slane %v381_v29, 2 }
 0x1a2   :  { %v369_v32 = vadd.f32 %v368_v30, %v367_v28  ;;  %v383_v33 = vadd.f32 %v382_v31, %v381_v29 }
 0x1a4   :  { %v370_v34 = vrot.slane %v369_v32, 1  ;;  %v384_v35 = vrot.slane %v383_v33, 1 }
 0x1a6   :  { %v371_v36 = vadd.f32 %v370_v34, %v369_v32  ;;  %v385_v37 = vadd.f32 %v384_v35, %v383_v33 }
 0x1a8   :  { %v372_v38 = vmul.f32 0.35355338, %v371_v36  ;;  %v386_v39 = vmul.f32 0.35355338, %v385_v37 }
 0x1aa   :  { %475 = vtanh.f32 %v372_v38 }
 0x1ab   :  { %477 = vtanh.f32 %v386_v39 }
 0x1b4   :  { %v476_v40 = vpop.eup %475 }
 0x1b5   :  { %v478_v41 = vpop.eup %477  ;;  %v388_v42 = vmul.f32 10.0, %v476_v40 }
 0x1b6   :  { %v390_v43 = vmul.f32 10.0, %v478_v41 }
 0x1b8   :  { %v391_v44 = vsub.f32 %v388_v42, %v390_v43  ;;  %v397_v45 = vsub.f32 %v390_v43, %v388_v42 }
 0x1ba   :  { %v392_v46 = vmul.f32 1.442695, %v391_v44  ;;  %v398_v47 = vmul.f32 1.442695, %v397_v45 }
 0x1bc   :  { %479 = vpow2.f32 %v392_v46 }
 0x1bd   :  { %481 = vpow2.f32 %v398_v47 }
 0x1c6   :  { %v480_v48 = vpop.eup %479 }
 0x1c7   :  { %v482_v49 = vpop.eup %481  ;;  %v394_v50 = vadd.f32 1.0, %v480_v48 }
 0x1c8   :  { %v400_v51 = vadd.f32 1.0, %v482_v49 }
 0x1c9   :  { %483 = vrcp.f32 %v394_v50 }
 0x1ca   :  { %485 = vrcp.f32 %v400_v51 }
 0x1d3   :  { %v484_v52 = vpop.eup %483 }
 0x1d4   :  { %v486_v53 = vpop.eup %485 }
 0x1d5   :  { %vm403_vm3 = vcmp.gt.f32.partialorder %v484_v52, %v486_v53  ;;  %v408_v54 = vsel %vm407_vm1, %v486_v53, %v484_v52 }
 0x1d6   :  { %v404_v55 = vsel %vm403_vm3, %v484_v52, %v486_v53  ;;  %v436_v56 = vsel %vm403_vm3, 1.0, %v513_v18 }
 0x1d7   :  { %v410_v57 = vsel %vm409_vm2, %v408_v54, %v404_v55 }
 0x1d8   :  { %v412_v58 = vsel %vm411_vm4, %v410_v57, %v436_v56 }
 0x1d9   :  { %413 = vst [vmem:[#allocation2] sm:$0xf] %v412_v58 }
 0x1da   :  { %498 = shalt.err (!%p495_p4)
}
 0x1db   :  { %s499_s21 = scalar_lea.hbm %s660_s6, 64 }
 0x1dc   :  { %p500_p5 = scmp.ne.s32.totalorder %s660_s6, %s499_s21  ;;  %p503_p6 = scmp.lt.u32.totalorder %s499_s21, %s660_s6 }
 0x1de   :  { %p505_p7 = pnand %p503_p6, %p500_p5 }
 0x1e0   :  { %508 = shalt.err (!%p505_p7)
}
 0x1e1   :  { %423 = dma.vmem_to_hbm [thread:$0]  %s421_s17, 64, %s660_s6, [#allocation3]  }
 0x1e2   :  { %509 = dma.done.wait [#allocation3], 64  }
 0x1e3   :  { %510 = vsyncadd [#allocation3], 4294967232 }
 0x1e4   :  { %427 = vsyncpa [#allocation3], 1 }

</bundles_post_ra>
